<compile_context>
chip_gen: v7x
topology: tpu7x:2x2x1
jax: 0.10.0
libtpu: 0.0.40
codegen_flags: <defaults>
</compile_context>

<pallas_src>
import functools
import math

import jax
import jax.numpy as jnp
from jax.experimental import pallas as pl
from jax.experimental.pallas import tpu as pltpu


def _mha_kernel(x_ref, wq_ref, bq_ref, wk_ref, bk_ref, wv_ref, bv_ref,
                wo_ref, bo_ref, o_ref, k_vmem, v_vmem,
                *, num_heads, head_dim, q_tile):
    """Grid = (batch, num_q_tiles).

    x_ref:          [1, S, H]   compute dtype; resident across the q-tile axis
    w*_ref:         [H, H]      compute dtype, pre-transposed to [in, out]
    b*_ref:         [1, H]      float32
    o_ref:          [1, TQ, H]  output query tile
    k_vmem/v_vmem:  [S, H]      VMEM scratch holding K/V for this batch element
    """
    qi = pl.program_id(1)
    cd = k_vmem.dtype                       # MXU compute dtype (bf16 or f32)
    scale = 1.0 / math.sqrt(head_dim)

    # --- K/V projections: once per batch element (q-tile axis is innermost). ---
    @pl.when(qi == 0)
    def _():
        x_full = x_ref[0]                   # [S, H]
        k = jnp.dot(x_full, wk_ref[...],
                    preferred_element_type=jnp.float32) + bk_ref[...]
        v = jnp.dot(x_full, wv_ref[...],
                    preferred_element_type=jnp.float32) + bv_ref[...]
        k_vmem[...] = k.astype(cd)
        v_vmem[...] = v.astype(cd)

    # --- Q projection for this query tile. ---
    q_start = pl.multiple_of(qi * q_tile, q_tile)
    x_q = x_ref[0, pl.ds(q_start, q_tile), :]                        # [TQ, H]
    q = jnp.dot(x_q, wq_ref[...],
                preferred_element_type=jnp.float32) + bq_ref[...]    # f32 [TQ, H]
    q = (q * scale).astype(cd)              # fold 1/sqrt(hd) once, cast for MXU

    # --- Per-head attention, fused with the output projection. ---
    acc = jnp.zeros((q_tile, wo_ref.shape[1]), jnp.float32)
    for h in range(num_heads):              # static, small
        lo = h * head_dim
        hi = lo + head_dim
        qh = q[:, lo:hi]                    # [TQ, hd]
        kh = k_vmem[:, lo:hi]               # [S,  hd]
        vh = v_vmem[:, lo:hi]               # [S,  hd]

        # scores = q_scaled @ k^T without an explicit transpose
        # (contract the last dim of both operands -> feeds the MXU directly).
        s = jax.lax.dot_general(qh, kh, (((1,), (1,)), ((), ())),
                                preferred_element_type=jnp.float32)  # [TQ, S]

        # softmax in f32; reciprocal on the EUP slot instead of a VPU divide.
        m = jnp.max(s, axis=-1, keepdims=True)
        e = jnp.exp(s - m)
        denom = jnp.sum(e, axis=-1, keepdims=True)
        p = (e * pl.reciprocal(denom, approx=True)).astype(cd)       # [TQ, S]

        ctx = jnp.dot(p, vh, preferred_element_type=jnp.float32)     # [TQ, hd]
        # Fused output projection: ctx_h @ W_o[rows of head h] (sublane-aligned
        # row slice) -> no head concat, no [TQ, H] context intermediate.
        acc = acc + jnp.dot(ctx.astype(cd), wo_ref[lo:hi, :],
                            preferred_element_type=jnp.float32)

    o_ref[0] = (acc + bo_ref[...]).astype(o_ref.dtype)


def _pick_q_tile(S):
    """Largest query-tile (multiple of 8, <=512) dividing S, else full S."""
    for t in (512, 256, 128, 64, 32, 16, 8):
        if S % t == 0:
            return t
    return S


def multi_head_attention(x, params, *, num_heads, compute_dtype=jnp.bfloat16):
    """x: [B, S, H]. params: weights as [in, out], biases as [1, H]."""
    B, S, H = x.shape
    head_dim = H // num_heads
    assert head_dim * num_heads == H
    out_dtype = x.dtype

    q_tile = _pick_q_tile(S)
    nq = S // q_tile

    # Cast activations / weights once at the wrapper: bf16 operands double
    # (v6e/v7x) / quadruple (v5e) MXU throughput and halve their DMA/VMEM;
    # accumulation stays f32 via preferred_element_type.  Biases stay f32.
    cd = compute_dtype
    xc = x.astype(cd)
    wq, wk, wv, wo = (params[n].astype(cd) for n in ("wq", "wk", "wv", "wo"))
    bq, bk, bv, bo = (params[n].astype(jnp.float32)
                      for n in ("bq", "bk", "bv", "bo"))

    kernel = functools.partial(_mha_kernel, num_heads=num_heads,
                               head_dim=head_dim, q_tile=q_tile)

    full_mat = pl.BlockSpec((H, H), lambda b, qi: (0, 0))
    full_vec = pl.BlockSpec((1, H), lambda b, qi: (0, 0))

    # Rough VMEM budget (resident weights + x block + K/V scratch +
    # double-buffered output tiles + working set), 2x headroom, clamped so it
    # also fits v7x's 64 MiB physical VMEM.
    isz = jnp.dtype(cd).itemsize
    est = (4 * H * H * isz            # projection weights (constant blocks)
           + 4 * H * 4                # biases
           + 2 * S * H * isz          # x block (double-buffered)
           + 2 * S * H * isz          # K/V scratch
           + 2 * 2 * q_tile * H * 4   # output tiles (double-buffered, f32)
           + 4 * q_tile * max(S, H) * 4)   # score tiles / accumulators
    vmem_limit = int(min(max(2 * est, 32 * 1024 * 1024), 60 * 1024 * 1024))

    return pl.pallas_call(
        kernel,
        out_shape=jax.ShapeDtypeStruct((B, S, H), out_dtype),
        grid_spec=pltpu.PrefetchScalarGridSpec(
            num_scalar_prefetch=0,
            grid=(B, nq),
            in_specs=[
                pl.BlockSpec((1, S, H), lambda b, qi: (b, 0, 0)),   # x (resident over qi)
                full_mat, full_vec,                                  # q_proj
                full_mat, full_vec,                                  # k_proj
                full_mat, full_vec,                                  # v_proj
                full_mat, full_vec,                                  # out_proj
            ],
            out_specs=pl.BlockSpec((1, q_tile, H), lambda b, qi: (b, qi, 0)),
            scratch_shapes=[
                pltpu.VMEM((S, H), cd),   # K for current batch element
                pltpu.VMEM((S, H), cd),   # V for current batch element
            ],
        ),
        compiler_params=pltpu.CompilerParams(
            # Batch axis parallel (megacore sharding on v7x); the q-tile axis
            # carries the K/V scratch across steps so it must stay "arbitrary".
            dimension_semantics=("parallel", "arbitrary"),
            vmem_limit_bytes=vmem_limit,
        ),
    )(xc, wq, bq, wk, bk, wv, bv, wo, bo)


def _reference_mha(x, params, num_heads):
    """Pure-JAX f32 reference reproducing the PyTorch forward (eval, no mask)."""
    B, S, H = x.shape
    hd = H // num_heads
    q = x @ params["wq"] + params["bq"]
    k = x @ params["wk"] + params["bk"]
    v = x @ params["wv"] + params["bv"]

    def split(t):  # [B,S,H] -> [B,nh,S,hd]
        return t.reshape(B, S, num_heads, hd).transpose(0, 2, 1, 3)

    q, k, v = split(q), split(k), split(v)
    scores = jnp.einsum("bhqd,bhkd->bhqk", q, k) / math.sqrt(hd)
    attn = jax.nn.softmax(scores, axis=-1)
    ctx = jnp.einsum("bhqk,bhkd->bhqd", attn, v)
    ctx = ctx.transpose(0, 2, 1, 3).reshape(B, S, H)
    return ctx @ params["wo"] + params["bo"]


if __name__ == "__main__":
    B, S, H = 2, 8, 32
    num_heads = 4

    key = jax.random.PRNGKey(0)
    keys = jax.random.split(key, 9)

    # Deterministic synthetic parameters. Weights stored as [in, out]
    # (transpose of nn.Linear's weight), biases as [1, H].
    bound = 1.0 / math.sqrt(H)

    def init_w(k):
        return jax.random.uniform(k, (H, H), jnp.float32, -bound, bound)

    def init_b(k):
        return jax.random.uniform(k, (1, H), jnp.float32, -bound, bound)

    params = {
        "wq": init_w(keys[0]), "bq": init_b(keys[1]),
        "wk": init_w(keys[2]), "bk": init_b(keys[3]),
        "wv": init_w(keys[4]), "bv": init_b(keys[5]),
        "wo": init_w(keys[6]), "bo": init_b(keys[7]),
    }

    x = jax.random.normal(keys[8], (B, S, H), jnp.float32)
    ref = _reference_mha(x, params, num_heads)

    # Default (performance) path: bf16 MXU operands, f32 accumulation.
    out_bf16 = jax.block_until_ready(
        multi_head_attention(x, params, num_heads=num_heads))
    assert out_bf16.shape == (B, S, H)
    assert jnp.allclose(out_bf16, ref, atol=3e-2, rtol=3e-2), \
        "bf16 kernel mismatch vs reference"

    # f32 path: tighter check of the kernel structure itself.
    out_f32 = jax.block_until_ready(
        multi_head_attention(x, params, num_heads=num_heads,
                             compute_dtype=jnp.float32))
    assert jnp.allclose(out_f32, ref, atol=2e-3, rtol=2e-3), \
        "f32 kernel mismatch vs reference"

    print("KERNEL_OK")
</pallas_src>

<mosaic_0001>
module attributes {stable_mosaic.version = 11 : i64} {
  func.func @_mha_kernel(%arg0: i32, %arg1: i32, %arg2: memref<1x8x32xbf16, #tpu.memory_space<vmem>>, %arg3: memref<32x32xbf16, #tpu.memory_space<vmem>>, %arg4: memref<1x32xf32, #tpu.memory_space<vmem>>, %arg5: memref<32x32xbf16, #tpu.memory_space<vmem>>, %arg6: memref<1x32xf32, #tpu.memory_space<vmem>>, %arg7: memref<32x32xbf16, #tpu.memory_space<vmem>>, %arg8: memref<1x32xf32, #tpu.memory_space<vmem>>, %arg9: memref<32x32xbf16, #tpu.memory_space<vmem>>, %arg10: memref<1x32xf32, #tpu.memory_space<vmem>>, %arg11: memref<1x8x32xf32, #tpu.memory_space<vmem>>, %arg12: memref<8x32xbf16, #tpu.memory_space<vmem>>, %arg13: memref<8x32xbf16, #tpu.memory_space<vmem>>) attributes {dimension_semantics = [#tpu.dimension_semantics<parallel>, #tpu.dimension_semantics<arbitrary>], iteration_bounds = array<i64: 2, 1>, scalar_prefetch = 0 : i64, scratch_operands = 2 : i64, tpu.core_type = #tpu.core_type<tc>, window_params = [{transform_indices = @transform_0, window_bounds = array<i64: 1, 8, 32>}, {pipeline_mode = #tpu.pipeline_mode<synchronous>, transform_indices = @transform_1, window_bounds = array<i64: 32, 32>}, {pipeline_mode = #tpu.pipeline_mode<synchronous>, transform_indices = @transform_2, window_bounds = array<i64: 1, 32>}, {pipeline_mode = #tpu.pipeline_mode<synchronous>, transform_indices = @transform_3, window_bounds = array<i64: 32, 32>}, {pipeline_mode = #tpu.pipeline_mode<synchronous>, transform_indices = @transform_4, window_bounds = array<i64: 1, 32>}, {pipeline_mode = #tpu.pipeline_mode<synchronous>, transform_indices = @transform_5, window_bounds = array<i64: 32, 32>}, {pipeline_mode = #tpu.pipeline_mode<synchronous>, transform_indices = @transform_6, window_bounds = array<i64: 1, 32>}, {pipeline_mode = #tpu.pipeline_mode<synchronous>, transform_indices = @transform_7, window_bounds = array<i64: 32, 32>}, {pipeline_mode = #tpu.pipeline_mode<synchronous>, transform_indices = @transform_8, window_bounds = array<i64: 1, 32>}, {transform_indices = @transform_9, window_bounds = array<i64: 1, 8, 32>}]} {
    %c0_i32 = arith.constant 0 : i32
    %0 = arith.cmpi eq, %arg1, %c0_i32 : i32
    %1 = arith.extui %0 : i1 to i32
    %c0_i32_0 = arith.constant 0 : i32
    %2 = arith.cmpi ne, %1, %c0_i32_0 : i32
    scf.if %2 {
      %c0_54 = arith.constant 0 : index
      %c0_55 = arith.constant 0 : index
      %c0_56 = arith.constant 0 : index
      %103 = vector.load %arg2[%c0_54, %c0_55, %c0_56] : memref<1x8x32xbf16, #tpu.memory_space<vmem>>, vector<1x8x32xbf16>
      %104 = vector.shape_cast %103 : vector<1x8x32xbf16> to vector<8x32xbf16>
      %c0_57 = arith.constant 0 : index
      %c0_58 = arith.constant 0 : index
      %105 = vector.load %arg5[%c0_57, %c0_58] : memref<32x32xbf16, #tpu.memory_space<vmem>>, vector<32x32xbf16>
      %cst_59 = arith.constant dense<0.000000e+00> : vector<8x32xf32>
      %106 = tpu.matmul %104, %105, %cst_59 {dimension_numbers = #tpu.dot_dimension_numbers<[1], [0], [0], [1], [0, 0, 1, 1], [], []>} : vector<8x32xbf16>, vector<32x32xbf16>, vector<8x32xf32> -> vector<8x32xf32>
      %c0_60 = arith.constant 0 : index
      %c0_61 = arith.constant 0 : index
      %107 = vector.load %arg6[%c0_60, %c0_61] : memref<1x32xf32, #tpu.memory_space<vmem>>, vector<1x32xf32>
      %108 = vector.broadcast %107 : vector<1x32xf32> to vector<8x32xf32>
      %109 = arith.addf %106, %108 : vector<8x32xf32>
      %c0_62 = arith.constant 0 : index
      %c0_63 = arith.constant 0 : index
      %110 = vector.load %arg7[%c0_62, %c0_63] : memref<32x32xbf16, #tpu.memory_space<vmem>>, vector<32x32xbf16>
      %cst_64 = arith.constant dense<0.000000e+00> : vector<8x32xf32>
      %111 = tpu.matmul %104, %110, %cst_64 {dimension_numbers = #tpu.dot_dimension_numbers<[1], [0], [0], [1], [0, 0, 1, 1], [], []>} : vector<8x32xbf16>, vector<32x32xbf16>, vector<8x32xf32> -> vector<8x32xf32>
      %c0_65 = arith.constant 0 : index
      %c0_66 = arith.constant 0 : index
      %112 = vector.load %arg8[%c0_65, %c0_66] : memref<1x32xf32, #tpu.memory_space<vmem>>, vector<1x32xf32>
      %113 = vector.broadcast %112 : vector<1x32xf32> to vector<8x32xf32>
      %114 = arith.addf %111, %113 : vector<8x32xf32>
      %115 = arith.truncf %109 : vector<8x32xf32> to vector<8x32xbf16>
      %c0_67 = arith.constant 0 : index
      %c0_68 = arith.constant 0 : index
      %116 = vector.load %arg12[%c0_67, %c0_68] : memref<8x32xbf16, #tpu.memory_space<vmem>>, vector<8x32xbf16>
      tpu.vector_store %arg12[%c0_67, %c0_68], %115 {strides = array<i32>} : memref<8x32xbf16, #tpu.memory_space<vmem>>, vector<8x32xbf16>,
      %117 = arith.truncf %114 : vector<8x32xf32> to vector<8x32xbf16>
      %c0_69 = arith.constant 0 : index
      %c0_70 = arith.constant 0 : index
      %118 = vector.load %arg13[%c0_69, %c0_70] : memref<8x32xbf16, #tpu.memory_space<vmem>>, vector<8x32xbf16>
      tpu.vector_store %arg13[%c0_69, %c0_70], %117 {strides = array<i32>} : memref<8x32xbf16, #tpu.memory_space<vmem>>, vector<8x32xbf16>,
    } else {
    }
    %c8_i32 = arith.constant 8 : i32
    %3 = arith.muli %arg1, %c8_i32 : i32
    %4 = tpu.assume_multiple %3, 8 : i32
    %c0 = arith.constant 0 : index
    %5 = arith.index_cast %4 : i32 to index
    %c0_1 = arith.constant 0 : index
    %6 = vector.load %arg2[%c0, %5, %c0_1] : memref<1x8x32xbf16, #tpu.memory_space<vmem>>, vector<1x8x32xbf16>
    %7 = vector.shape_cast %6 : vector<1x8x32xbf16> to vector<8x32xbf16>
    %c0_2 = arith.constant 0 : index
    %c0_3 = arith.constant 0 : index
    %8 = vector.load %arg3[%c0_2, %c0_3] : memref<32x32xbf16, #tpu.memory_space<vmem>>, vector<32x32xbf16>
    %cst = arith.constant dense<0.000000e+00> : vector<8x32xf32>
    %9 = tpu.matmul %7, %8, %cst {dimension_numbers = #tpu.dot_dimension_numbers<[1], [0], [0], [1], [0, 0, 1, 1], [], []>} : vector<8x32xbf16>, vector<32x32xbf16>, vector<8x32xf32> -> vector<8x32xf32>
    %c0_4 = arith.constant 0 : index
    %c0_5 = arith.constant 0 : index
    %10 = vector.load %arg4[%c0_4, %c0_5] : memref<1x32xf32, #tpu.memory_space<vmem>>, vector<1x32xf32>
    %11 = vector.broadcast %10 : vector<1x32xf32> to vector<8x32xf32>
    %12 = arith.addf %9, %11 : vector<8x32xf32>
    %cst_6 = arith.constant 0.353553385 : f32
    %13 = vector.broadcast %cst_6 : f32 to vector<8x32xf32>
    %14 = arith.mulf %12, %13 : vector<8x32xf32>
    %15 = arith.truncf %14 : vector<8x32xf32> to vector<8x32xbf16>
    %cst_7 = arith.constant 0.000000e+00 : f32
    %16 = vector.broadcast %cst_7 : f32 to vector<8x32xf32>
    %17 = vector.extract_strided_slice %15 {offsets = [0, 0], sizes = [8, 8], strides = [1, 1]} : vector<8x32xbf16> to vector<8x8xbf16>
    %c0_8 = arith.constant 0 : index
    %c0_9 = arith.constant 0 : index
    %18 = vector.load %arg12[%c0_8, %c0_9] : memref<8x32xbf16, #tpu.memory_space<vmem>>, vector<8x8xbf16>
    %c0_10 = arith.constant 0 : index
    %c0_11 = arith.constant 0 : index
    %19 = vector.load %arg13[%c0_10, %c0_11] : memref<8x32xbf16, #tpu.memory_space<vmem>>, vector<8x8xbf16>
    %cst_12 = arith.constant dense<0.000000e+00> : vector<8x8xf32>
    %20 = tpu.matmul %17, %18, %cst_12 {dimension_numbers = #tpu.dot_dimension_numbers<[1], [1], [0], [0], [0, 0, 1, 0], [], []>} : vector<8x8xbf16>, vector<8x8xbf16>, vector<8x8xf32> -> vector<8x8xf32>
    %cst_13 = arith.constant dense<0xFF800000> : vector<8xf32>
    %21 = vector.multi_reduction <maximumf>, %20, %cst_13 [1] : vector<8x8xf32> to vector<8xf32>
    %22 = vector.shape_cast %21 : vector<8xf32> to vector<8x1xf32>
    %23 = vector.broadcast %22 : vector<8x1xf32> to vector<8x8xf32>
    %24 = arith.subf %20, %23 : vector<8x8xf32>
    %25 = math.exp %24 : vector<8x8xf32>
    %cst_14 = arith.constant dense<0.000000e+00> : vector<8xf32>
    %26 = vector.multi_reduction <add>, %25, %cst_14 [1] : vector<8x8xf32> to vector<8xf32>
    %27 = vector.shape_cast %26 : vector<8xf32> to vector<8x1xf32>
    %28 = tpu.reciprocal %27 {approx = true} : vector<8x1xf32> -> vector<8x1xf32>
    %29 = vector.broadcast %28 : vector<8x1xf32> to vector<8x8xf32>
    %30 = arith.mulf %25, %29 : vector<8x8xf32>
    %31 = arith.truncf %30 : vector<8x8xf32> to vector<8x8xbf16>
    %cst_15 = arith.constant dense<0.000000e+00> : vector<8x8xf32>
    %32 = tpu.matmul %31, %19, %cst_15 {dimension_numbers = #tpu.dot_dimension_numbers<[1], [0], [0], [1], [0, 0, 1, 1], [], []>} : vector<8x8xbf16>, vector<8x8xbf16>, vector<8x8xf32> -> vector<8x8xf32>
    %33 = arith.truncf %32 : vector<8x8xf32> to vector<8x8xbf16>
    %c0_16 = arith.constant 0 : index
    %c0_17 = arith.constant 0 : index
    %34 = vector.load %arg9[%c0_16, %c0_17] : memref<32x32xbf16, #tpu.memory_space<vmem>>, vector<8x32xbf16>
    %cst_18 = arith.constant dense<0.000000e+00> : vector<8x32xf32>
    %35 = tpu.matmul %33, %34, %cst_18 {dimension_numbers = #tpu.dot_dimension_numbers<[1], [0], [0], [1], [0, 0, 1, 1], [], []>} : vector<8x8xbf16>, vector<8x32xbf16>, vector<8x32xf32> -> vector<8x32xf32>
    %36 = arith.addf %16, %35 : vector<8x32xf32>
    %37 = vector.extract_strided_slice %15 {offsets = [0, 8], sizes = [8, 8], strides = [1, 1]} : vector<8x32xbf16> to vector<8x8xbf16>
    %c0_19 = arith.constant 0 : index
    %c8 = arith.constant 8 : index
    %38 = vector.load %arg12[%c0_19, %c8] : memref<8x32xbf16, #tpu.memory_space<vmem>>, vector<8x8xbf16>
    %c0_20 = arith.constant 0 : index
    %c8_21 = arith.constant 8 : index
    %39 = vector.load %arg13[%c0_20, %c8_21] : memref<8x32xbf16, #tpu.memory_space<vmem>>, vector<8x8xbf16>
    %cst_22 = arith.constant dense<0.000000e+00> : vector<8x8xf32>
    %40 = tpu.matmul %37, %38, %cst_22 {dimension_numbers = #tpu.dot_dimension_numbers<[1], [1], [0], [0], [0, 0, 1, 0], [], []>} : vector<8x8xbf16>, vector<8x8xbf16>, vector<8x8xf32> -> vector<8x8xf32>
    %cst_23 = arith.constant dense<0xFF800000> : vector<8xf32>
    %41 = vector.multi_reduction <maximumf>, %40, %cst_23 [1] : vector<8x8xf32> to vector<8xf32>
    %42 = vector.shape_cast %41 : vector<8xf32> to vector<8x1xf32>
    %43 = vector.broadcast %42 : vector<8x1xf32> to vector<8x8xf32>
    %44 = arith.subf %40, %43 : vector<8x8xf32>
    %45 = math.exp %44 : vector<8x8xf32>
    %cst_24 = arith.constant dense<0.000000e+00> : vector<8xf32>
    %46 = vector.multi_reduction <add>, %45, %cst_24 [1] : vector<8x8xf32> to vector<8xf32>
    %47 = vector.shape_cast %46 : vector<8xf32> to vector<8x1xf32>
    %48 = tpu.reciprocal %47 {approx = true} : vector<8x1xf32> -> vector<8x1xf32>
    %49 = vector.broadcast %48 : vector<8x1xf32> to vector<8x8xf32>
    %50 = arith.mulf %45, %49 : vector<8x8xf32>
    %51 = arith.truncf %50 : vector<8x8xf32> to vector<8x8xbf16>
    %cst_25 = arith.constant dense<0.000000e+00> : vector<8x8xf32>
    %52 = tpu.matmul %51, %39, %cst_25 {dimension_numbers = #tpu.dot_dimension_numbers<[1], [0], [0], [1], [0, 0, 1, 1], [], []>} : vector<8x8xbf16>, vector<8x8xbf16>, vector<8x8xf32> -> vector<8x8xf32>
    %53 = arith.truncf %52 : vector<8x8xf32> to vector<8x8xbf16>
    %c8_26 = arith.constant 8 : index
    %c0_27 = arith.constant 0 : index
    %54 = vector.load %arg9[%c8_26, %c0_27] : memref<32x32xbf16, #tpu.memory_space<vmem>>, vector<8x32xbf16>
    %cst_28 = arith.constant dense<0.000000e+00> : vector<8x32xf32>
    %55 = tpu.matmul %53, %54, %cst_28 {dimension_numbers = #tpu.dot_dimension_numbers<[1], [0], [0], [1], [0, 0, 1, 1], [], []>} : vector<8x8xbf16>, vector<8x32xbf16>, vector<8x32xf32> -> vector<8x32xf32>
    %56 = arith.addf %36, %55 : vector<8x32xf32>
    %57 = vector.extract_strided_slice %15 {offsets = [0, 16], sizes = [8, 8], strides = [1, 1]} : vector<8x32xbf16> to vector<8x8xbf16>
    %c0_29 = arith.constant 0 : index
    %c16 = arith.constant 16 : index
    %58 = vector.load %arg12[%c0_29, %c16] : memref<8x32xbf16, #tpu.memory_space<vmem>>, vector<8x8xbf16>
    %c0_30 = arith.constant 0 : index
    %c16_31 = arith.constant 16 : index
    %59 = vector.load %arg13[%c0_30, %c16_31] : memref<8x32xbf16, #tpu.memory_space<vmem>>, vector<8x8xbf16>
    %cst_32 = arith.constant dense<0.000000e+00> : vector<8x8xf32>
    %60 = tpu.matmul %57, %58, %cst_32 {dimension_numbers = #tpu.dot_dimension_numbers<[1], [1], [0], [0], [0, 0, 1, 0], [], []>} : vector<8x8xbf16>, vector<8x8xbf16>, vector<8x8xf32> -> vector<8x8xf32>
    %cst_33 = arith.constant dense<0xFF800000> : vector<8xf32>
    %61 = vector.multi_reduction <maximumf>, %60, %cst_33 [1] : vector<8x8xf32> to vector<8xf32>
    %62 = vector.shape_cast %61 : vector<8xf32> to vector<8x1xf32>
    %63 = vector.broadcast %62 : vector<8x1xf32> to vector<8x8xf32>
    %64 = arith.subf %60, %63 : vector<8x8xf32>
    %65 = math.exp %64 : vector<8x8xf32>
    %cst_34 = arith.constant dense<0.000000e+00> : vector<8xf32>
    %66 = vector.multi_reduction <add>, %65, %cst_34 [1] : vector<8x8xf32> to vector<8xf32>
    %67 = vector.shape_cast %66 : vector<8xf32> to vector<8x1xf32>
    %68 = tpu.reciprocal %67 {approx = true} : vector<8x1xf32> -> vector<8x1xf32>
    %69 = vector.broadcast %68 : vector<8x1xf32> to vector<8x8xf32>
    %70 = arith.mulf %65, %69 : vector<8x8xf32>
    %71 = arith.truncf %70 : vector<8x8xf32> to vector<8x8xbf16>
    %cst_35 = arith.constant dense<0.000000e+00> : vector<8x8xf32>
    %72 = tpu.matmul %71, %59, %cst_35 {dimension_numbers = #tpu.dot_dimension_numbers<[1], [0], [0], [1], [0, 0, 1, 1], [], []>} : vector<8x8xbf16>, vector<8x8xbf16>, vector<8x8xf32> -> vector<8x8xf32>
    %73 = arith.truncf %72 : vector<8x8xf32> to vector<8x8xbf16>
    %c16_36 = arith.constant 16 : index
    %c0_37 = arith.constant 0 : index
    %74 = vector.load %arg9[%c16_36, %c0_37] : memref<32x32xbf16, #tpu.memory_space<vmem>>, vector<8x32xbf16>
    %cst_38 = arith.constant dense<0.000000e+00> : vector<8x32xf32>
    %75 = tpu.matmul %73, %74, %cst_38 {dimension_numbers = #tpu.dot_dimension_numbers<[1], [0], [0], [1], [0, 0, 1, 1], [], []>} : vector<8x8xbf16>, vector<8x32xbf16>, vector<8x32xf32> -> vector<8x32xf32>
    %76 = arith.addf %56, %75 : vector<8x32xf32>
    %77 = vector.extract_strided_slice %15 {offsets = [0, 24], sizes = [8, 8], strides = [1, 1]} : vector<8x32xbf16> to vector<8x8xbf16>
    %c0_39 = arith.constant 0 : index
    %c24 = arith.constant 24 : index
    %78 = vector.load %arg12[%c0_39, %c24] : memref<8x32xbf16, #tpu.memory_space<vmem>>, vector<8x8xbf16>
    %c0_40 = arith.constant 0 : index
    %c24_41 = arith.constant 24 : index
    %79 = vector.load %arg13[%c0_40, %c24_41] : memref<8x32xbf16, #tpu.memory_space<vmem>>, vector<8x8xbf16>
    %cst_42 = arith.constant dense<0.000000e+00> : vector<8x8xf32>
    %80 = tpu.matmul %77, %78, %cst_42 {dimension_numbers = #tpu.dot_dimension_numbers<[1], [1], [0], [0], [0, 0, 1, 0], [], []>} : vector<8x8xbf16>, vector<8x8xbf16>, vector<8x8xf32> -> vector<8x8xf32>
    %cst_43 = arith.constant dense<0xFF800000> : vector<8xf32>
    %81 = vector.multi_reduction <maximumf>, %80, %cst_43 [1] : vector<8x8xf32> to vector<8xf32>
    %82 = vector.shape_cast %81 : vector<8xf32> to vector<8x1xf32>
    %83 = vector.broadcast %82 : vector<8x1xf32> to vector<8x8xf32>
    %84 = arith.subf %80, %83 : vector<8x8xf32>
    %85 = math.exp %84 : vector<8x8xf32>
    %cst_44 = arith.constant dense<0.000000e+00> : vector<8xf32>
    %86 = vector.multi_reduction <add>, %85, %cst_44 [1] : vector<8x8xf32> to vector<8xf32>
    %87 = vector.shape_cast %86 : vector<8xf32> to vector<8x1xf32>
    %88 = tpu.reciprocal %87 {approx = true} : vector<8x1xf32> -> vector<8x1xf32>
    %89 = vector.broadcast %88 : vector<8x1xf32> to vector<8x8xf32>
    %90 = arith.mulf %85, %89 : vector<8x8xf32>
    %91 = arith.truncf %90 : vector<8x8xf32> to vector<8x8xbf16>
    %cst_45 = arith.constant dense<0.000000e+00> : vector<8x8xf32>
    %92 = tpu.matmul %91, %79, %cst_45 {dimension_numbers = #tpu.dot_dimension_numbers<[1], [0], [0], [1], [0, 0, 1, 1], [], []>} : vector<8x8xbf16>, vector<8x8xbf16>, vector<8x8xf32> -> vector<8x8xf32>
    %93 = arith.truncf %92 : vector<8x8xf32> to vector<8x8xbf16>
    %c24_46 = arith.constant 24 : index
    %c0_47 = arith.constant 0 : index
    %94 = vector.load %arg9[%c24_46, %c0_47] : memref<32x32xbf16, #tpu.memory_space<vmem>>, vector<8x32xbf16>
    %cst_48 = arith.constant dense<0.000000e+00> : vector<8x32xf32>
    %95 = tpu.matmul %93, %94, %cst_48 {dimension_numbers = #tpu.dot_dimension_numbers<[1], [0], [0], [1], [0, 0, 1, 1], [], []>} : vector<8x8xbf16>, vector<8x32xbf16>, vector<8x32xf32> -> vector<8x32xf32>
    %96 = arith.addf %76, %95 : vector<8x32xf32>
    %c0_49 = arith.constant 0 : index
    %c0_50 = arith.constant 0 : index
    %97 = vector.load %arg10[%c0_49, %c0_50] : memref<1x32xf32, #tpu.memory_space<vmem>>, vector<1x32xf32>
    %98 = vector.broadcast %97 : vector<1x32xf32> to vector<8x32xf32>
    %99 = arith.addf %96, %98 : vector<8x32xf32>
    %c0_51 = arith.constant 0 : index
    %c0_52 = arith.constant 0 : index
    %c0_53 = arith.constant 0 : index
    %100 = vector.load %arg11[%c0_51, %c0_52, %c0_53] : memref<1x8x32xf32, #tpu.memory_space<vmem>>, vector<1x8x32xf32>
    %101 = vector.shape_cast %100 : vector<1x8x32xf32> to vector<8x32xf32>
    %102 = vector.shape_cast %99 : vector<8x32xf32> to vector<1x8x32xf32>
    tpu.vector_store %arg11[%c0_51, %c0_52, %c0_53], %102 {strides = array<i32>} : memref<1x8x32xf32, #tpu.memory_space<vmem>>, vector<1x8x32xf32>,
    return
  }
  func.func @transform_0(%arg0: i32, %arg1: i32) -> (i32, i32, i32) {
    %c0_i32 = arith.constant 0 : i32
    %c0_i32_0 = arith.constant 0 : i32
    %c0_i32_1 = arith.constant 0 : i32
    return %arg0, %c0_i32, %c0_i32_0 : i32, i32, i32
  }
  func.func @transform_1(%arg0: i32, %arg1: i32) -> (i32, i32) {
    %c0_i32 = arith.constant 0 : i32
    %c0_i32_0 = arith.constant 0 : i32
    %c0_i32_1 = arith.constant 0 : i32
    return %c0_i32, %c0_i32_0 : i32, i32
  }
  func.func @transform_2(%arg0: i32, %arg1: i32) -> (i32, i32) {
    %c0_i32 = arith.constant 0 : i32
    %c0_i32_0 = arith.constant 0 : i32
    %c0_i32_1 = arith.constant 0 : i32
    return %c0_i32, %c0_i32_0 : i32, i32
  }
  func.func @transform_3(%arg0: i32, %arg1: i32) -> (i32, i32) {
    %c0_i32 = arith.constant 0 : i32
    %c0_i32_0 = arith.constant 0 : i32
    %c0_i32_1 = arith.constant 0 : i32
    return %c0_i32, %c0_i32_0 : i32, i32
  }
  func.func @transform_4(%arg0: i32, %arg1: i32) -> (i32, i32) {
    %c0_i32 = arith.constant 0 : i32
    %c0_i32_0 = arith.constant 0 : i32
    %c0_i32_1 = arith.constant 0 : i32
    return %c0_i32, %c0_i32_0 : i32, i32
  }
  func.func @transform_5(%arg0: i32, %arg1: i32) -> (i32, i32) {
    %c0_i32 = arith.constant 0 : i32
    %c0_i32_0 = arith.constant 0 : i32
    %c0_i32_1 = arith.constant 0 : i32
    return %c0_i32, %c0_i32_0 : i32, i32
  }
  func.func @transform_6(%arg0: i32, %arg1: i32) -> (i32, i32) {
    %c0_i32 = arith.constant 0 : i32
    %c0_i32_0 = arith.constant 0 : i32
    %c0_i32_1 = arith.constant 0 : i32
    return %c0_i32, %c0_i32_0 : i32, i32
  }
  func.func @transform_7(%arg0: i32, %arg1: i32) -> (i32, i32) {
    %c0_i32 = arith.constant 0 : i32
    %c0_i32_0 = arith.constant 0 : i32
    %c0_i32_1 = arith.constant 0 : i32
    return %c0_i32, %c0_i32_0 : i32, i32
  }
  func.func @transform_8(%arg0: i32, %arg1: i32) -> (i32, i32) {
    %c0_i32 = arith.constant 0 : i32
    %c0_i32_0 = arith.constant 0 : i32
    %c0_i32_1 = arith.constant 0 : i32
    return %c0_i32, %c0_i32_0 : i32, i32
  }
  func.func @transform_9(%arg0: i32, %arg1: i32) -> (i32, i32, i32) {
    %c0_i32 = arith.constant 0 : i32
    %c0_i32_0 = arith.constant 0 : i32
    return %arg0, %arg1, %c0_i32 : i32, i32, i32
  }
}

</mosaic_0001>

<bundles_post_ra>
// kernel: tpu_custom_call.1
= control target key start
LH: loop header
LB: loop body
LE: loop exit
PB: predicated region body
PF: predicated region fallthrough
CT: control target
= control target key end

     0   :  { %s2376_s0 = inlined_call_operand.hbm [shape: bf16[2,8,32], index: 0, kind: input, shape index: {}]   ;;  %s2377_s1 = inlined_call_operand.hbm [shape: bf16[32,32], index: 1, kind: input, shape index: {}]   ;;  %s2378_s2 = inlined_call_operand.vmem [shape: f32[1,32], index: 2, kind: input, shape index: {}]   ;;  %s2379_s3 = inlined_call_operand.hbm [shape: bf16[32,32], index: 3, kind: input, shape index: {}]   ;;  %s2380_s4 = inlined_call_operand.vmem [shape: f32[1,32], index: 4, kind: input, shape index: {}]   ;;  %s2381_s5 = inlined_call_operand.vmem [shape: bf16[32,32], index: 5, kind: input, shape index: {}]   ;;  %s2382_s6 = inlined_call_operand.vmem [shape: f32[1,32], index: 6, kind: input, shape index: {}]   ;;  %s2383_s7 = inlined_call_operand.hbm [shape: bf16[32,32], index: 7, kind: input, shape index: {}]   ;;  %s2384_s8 = inlined_call_operand.vmem [shape: f32[1,32], index: 8, kind: input, shape index: {}]   ;;  %s2385_s9 = inlined_call_operand.hbm [shape: f32[2,8,32], index: 9, kind: output, shape index: {}]  }
   0x1   :  { %2393 = sst [smem:[#allocation20_spill]] %s2382_s6 }
   0x2   :  { %2394 = sst [smem:[#allocation21_spill]] %s2384_s8 }
   0x3   :  { %2395 = sst [smem:[#allocation22_spill]] %s2385_s9 }
   0x4   :  { %14 = vsyncpa [#allocation5], 0 }
   0x5   :  { %16 = vsyncpa [#allocation5 + $0x1], 0 }
   0x6   :  { %17 = vsyncpa [#allocation8], 0 }
   0x7   :  { %18 = vsyncpa [#allocation11], 0 }
   0x8   :  { %19 = vsyncpa [#allocation6], 0 }
   0x9   :  { %21 = vsyncpa [#allocation6 + $0x1], 0  ;;  %s1962_s30 = smov 0   ;;  %s1964_s10 = smov 0  }
   0xa   :  { %s1966_s11 = smov 0   ;;  %s1968_s12 = smov 0  }
   0xb   :  { %s1970_s13 = smov 0   ;;  %s1972_s14 = smov 0  }
   0xc LB: > { %2396 = sst [smem:[#allocation17_spill]] %s1878_s30  ;;  %s1395_s15 = sadd.s32 4294967295, %s1898_s14   ;;  %s1898_s14 = sphi %s1972_s14, %s27_s14   ;;  %s1894_s13 = sphi %s1970_s13, %s2424_s13   ;;  %s1890_s12 = sphi %s1968_s12, %s2423_s12   ;;  %s1886_s11 = sphi %s1966_s11, %s2422_s11   ;;  %s1882_s10 = sphi %s1964_s10, %s2421_s10   ;;  %s1878_s30 = sphi %s1962_s30, %s2420_s30  }
   0xd   : > { %2397 = sst [smem:[#allocation18_spill]] %s1890_s12  ;;  %s1396_s16 = sadd.s32 4294967294, %s1898_s14  }
   0xe   : > { %p59_p0 = scmp.ne.s32.totalorder %s1882_s10, %s1878_s30  ;;  %p1996_p1 = scmp.eq.s32.totalorder %s1395_s15, 0 }
   0xf   : > { %p2000_p2 = scmp.eq.s32.totalorder %s1395_s15, 1  ;;  %p259_p3 = scmp.eq.s32.totalorder %s1396_s16, 1 }
  0x10   : > { %s2398_s17 = scalar_select %p1996_p1, 1, 0 }
  0x11   : > { %s2399_s18 = scalar_select %p2000_p2, 1, 0 }
  0x12   : > { %p2006_p4 = por %p1996_p1, %p59_p0  ;;  %p1397_p5 = scmp.ge.s32.totalorder %s1898_s14, 1 }
  0x13   : > { %p2011_p6 = por %p259_p3, %p59_p0  ;;  %p266_p7 = scmp.lt.s32.totalorder %s1898_s14, 3 }
  0x14   : > { %s2400_s19 = scalar_select %p2006_p4, 1, 0 }
  0x15   : > { %s2401_s20 = scalar_select %p2011_p6, 1, 0 }
  0x16   : > { %p2016_p8 = pnand %p1397_p5, %p266_p7  ;;  %s1900_s22 = smov [#allocation7]  }
  0x17   : > { %2402 = sst [smem:[#allocation19_spill]] %s2401_s20  ;;  %s278_s23 = sshll.u32 %s1900_s22, 4  ;;  %s2020_s23 = int_to_ptr.vmem [resolvable:$true] %s278_s23 }
  0x18   : > { %s2403_s21 = scalar_select %p2016_p8, 1, 0 }
  0x19   : > { %p1586_p9 = pneg %p2016_p8  ;;  %s1901_s25 = smov [#allocation9]  }
  0x1a   : > { %s294_s26 = sshll.u32 %s1901_s25, 4  ;;  %s1902_s27 = smov [#allocation10]   ;;  %s2031_s26 = int_to_ptr.vmem [resolvable:$true] %s294_s26 }
  0x1b   : > { %p2027_p11 = pnand %p1586_p9, %p1996_p1  ;;  %s2033_s28 = sshll.u32 %s1902_s27, 4  ;;  %s317_s28 = int_to_ptr.vmem [resolvable:$true] %s2033_s28 }
  0x1c   : > { %s1694_s16 = scalar_lea.hbm %s2377_s1, 256 }
  0x1d   : > { %p1695_p12 = scmp.ne.s32.totalorder %s2377_s1, %s1694_s16  ;;  %p2043_p13 = pneg %p2027_p11 }
  0x1e   : > { %p1701_p5 = scmp.lt.u32.totalorder %s1694_s16, %s2377_s1 }
  0x1f   : > { %p1697_p0 = pnand %p2043_p13, %p1695_p12 }
  0x21   : > { %p1698_p3 = pneg %p1697_p0 }
  0x23   : > { %p1703_p7 = pnand %p1701_p5, %p1698_p3 }
  0x25   : > { %1706 = shalt.err (!%p1703_p7)
}
  0x26   : > { %s1707_s20 = scalar_lea.vmem %s2020_s23, 256  ;;  %p1715_p1 = scmp.lt.s32.totalorder %s2020_s23, %s2020_s23 }
  0x27   : > { %p1708_p9 = scmp.ne.s32.totalorder %s2020_s23, %s1707_s20  ;;  %p1716_p4 = scmp.lt.s32.totalorder %s1707_s20, %s1707_s20 }
  0x29   : > { %p1710_p10 = pnand %p1708_p9, %p2043_p13  ;;  %p1717_p12 = por %p1716_p4, %p1715_p1 }
  0x2b   : > { %p1711_p6 = pneg %p1710_p10 }
  0x2d   : > { %p1718_p0 = pnand %p1717_p12, %p1711_p6 }
  0x2f   : > { %1721 = shalt.err (!%p1718_p0)
}
  0x30   : > { %s1903_s29 = smov 64   ;;  %s1904_s15 = smov 4  }
  0x31   : > { %1589 = dma.hbm_to_vmem [thread:$0]  (!%p2027_p11), %s2377_s1, 256, %s2020_s23, [#allocation8], %s1903_s29, %s1903_s29, %s1904_s15  }
  0x32   : > { %s1722_s20 = scalar_lea.hbm %s2379_s3, 256 }
  0x33   : > { %p1723_p1 = scmp.ne.s32.totalorder %s2379_s3, %s1722_s20  ;;  %p1729_p10 = scmp.lt.u32.totalorder %s1722_s20, %s2379_s3 }
  0x35   : > { %p1725_p4 = pnand %p1723_p1, %p2043_p13 }
  0x37   : > { %p1726_p6 = pneg %p1725_p4 }
  0x39   : > { %p1731_p3 = pnand %p1729_p10, %p1726_p6 }
  0x3b   : > { %1734 = shalt.err (!%p1731_p3)
}
  0x3c   : > { %s1735_s23 = scalar_lea.vmem %s2031_s26, 256  ;;  %p1743_p12 = scmp.lt.s32.totalorder %s2031_s26, %s2031_s26 }
  0x3d   : > { %p1736_p5 = scmp.ne.s32.totalorder %s2031_s26, %s1735_s23  ;;  %p1744_p0 = scmp.lt.s32.totalorder %s1735_s23, %s1735_s23 }
  0x3f   : > { %p1738_p7 = pnand %p1736_p5, %p2043_p13  ;;  %p1745_p1 = por %p1744_p0, %p1743_p12 }
  0x41   : > { %p1739_p9 = pneg %p1738_p7 }
  0x43   : > { %p1746_p4 = pnand %p1745_p1, %p1739_p9 }
  0x45   : > { %1749 = shalt.err (!%p1746_p4)
}
  0x46   : > { %1592 = dma.hbm_to_vmem [thread:$0]  (!%p2027_p11), %s2379_s3, 256, %s2031_s26, [#allocation8], %s1903_s29, %s1903_s29, %s1904_s15  }
  0x47   : > { %s1750_s16 = scalar_lea.hbm %s2383_s7, 256 }
  0x48   : > { %p1751_p6 = scmp.ne.s32.totalorder %s2383_s7, %s1750_s16  ;;  %p1757_p5 = scmp.lt.u32.totalorder %s1750_s16, %s2383_s7 }
  0x4a   : > { %p1753_p10 = pnand %p1751_p6, %p2043_p13 }
  0x4c   : > { %p1754_p3 = pneg %p1753_p10 }
  0x4e   : > { %p1759_p7 = pnand %p1757_p5, %p1754_p3 }
  0x50   : > { %1762 = shalt.err (!%p1759_p7)
}
  0x51   : > { %s1763_s23 = scalar_lea.vmem %s317_s28, 256  ;;  %p1771_p1 = scmp.lt.s32.totalorder %s317_s28, %s317_s28 }
  0x52   : > { %p1764_p9 = scmp.ne.s32.totalorder %s317_s28, %s1763_s23  ;;  %p1772_p4 = scmp.lt.s32.totalorder %s1763_s23, %s1763_s23 }
  0x54   : > { %p1766_p12 = pnand %p1764_p9, %p2043_p13  ;;  %p1773_p8 = por %p1772_p4, %p1771_p1 }
  0x56   : > { %p1767_p0 = pneg %p1766_p12 }
  0x58   : > { %p1774_p2 = pnand %p1773_p8, %p1767_p0 }
  0x5a   : > { %1777 = shalt.err (!%p1774_p2)
}
  0x5b   : > { %1595 = dma.hbm_to_vmem [thread:$0]  (!%p2027_p11), %s2383_s7, 256, %s317_s28, [#allocation11], %s1903_s29, %s1903_s29, %s1904_s15  }
  0x5c   : > { %s46_s30 = sadd.s32 1, %s1886_s11  ;;  %s39_s24 = sadd.s32 1, %s1894_s13 }
  0x5d   : > { %p53_p2 = scmp.ne.s32.totalorder %s1886_s11, %s1882_s10  ;;  %p41_p8 = scmp.ge.s32.totalorder %s39_s24, 2 }
  0x5e   : > { %p54_p13 = scmp.eq.s32.totalorder %s1898_s14, 0  ;;  %p2406_p6 = scmp.ne.s32.totalorder %s2399_s18, 0 }
  0x5f   : > { %p1607_p3 = scmp.lt.s32.totalorder %s1898_s14, 2  ;;  %s2426_s24 = smov (%p41_p8, %s39_s24), 0 }
  0x60   : > { %p2122_p10 = por %p2406_p6, %p53_p2  ;;  %p55_p5 = por %p54_p13, %p53_p2 }
  0x61   : > { %s333_s9 = sand.u32 1, %s1886_s11   ;;  %s43_s12 = ssub.s32 %s1894_s13, %s2426_s24 }
  0x62   : > { %p44_p7 = scmp.eq.s32.totalorder %s43_s12, 0  ;;  %s1402_s28 = sshll.u32 %s333_s9, 2 }
  0x63   : > { %s1403_s29 = sshll.u32 %s1894_s13, 6  ;;  %s337_s25 = scalar_lea.vmem [#allocation4], %s1402_s28 }
  0x64   : > { %s2134_s15 = scalar_select %p44_p7, %s1886_s11, %s46_s30  }
  0x65   : > { %s2139_s18 = scalar_lea.hbm %s2376_s0, %s1403_s29  ;;  %s344_s27 = sshll.u32 %s337_s25, 4  ;;  %s2141_s27 = int_to_ptr.vmem [resolvable:$true] %s344_s27 }
  0x66   : > { %p2145_p11 = pnand %p1607_p3, %p55_p5  ;;  %s334_s23 = scalar_lea.sflag [#allocation5], %s333_s9 }
  0x67   : > { %s1778_s26 = scalar_lea.hbm %s2139_s18, 64  ;;  %s1783_s12 = scalar_lea.hbm %s2376_s0, 128 }
  0x68   : > { %p1779_p9 = scmp.ne.s32.totalorder %s2139_s18, %s1778_s26  ;;  %p1780_p12 = pneg %p2145_p11 }
  0x69   : > { %p1784_p4 = scmp.lt.u32.totalorder %s2139_s18, %s2376_s0  ;;  %p1785_p2 = scmp.lt.u32.totalorder %s1783_s12, %s1778_s26 }
  0x6a   : > { %p1781_p0 = pnand %p1780_p12, %p1779_p9  ;;  %p1787_p13 = scmp.lt.u32.totalorder %s1778_s26, %s2139_s18 }
  0x6b   : > { %p1786_p8 = por %p1785_p2, %p1784_p4 }
  0x6c   : > { %p1782_p1 = pneg %p1781_p0 }
  0x6d   : > { %p1788_p6 = por %p1787_p13, %p1786_p8 }
  0x6f   : > { %p1789_p3 = pnand %p1788_p6, %p1782_p1 }
  0x71   : > { %1792 = shalt.err (!%p1789_p3)
}
  0x72   : > { %s1793_s9 = scalar_lea.vmem %s2141_s27, 64  ;;  %s1905_s16 = smov [#allocation4]  }
  0x73   : > { %p1794_p5 = scmp.ne.s32.totalorder %s2141_s27, %s1793_s9  ;;  %s1798_s22 = sshll.u32 %s1905_s16, 4  ;;  %s1799_s22 = int_to_ptr.vmem [resolvable:$false] %s1798_s22 }
  0x74   : > { %s1800_s25 = scalar_lea.vmem %s1799_s22, 128  ;;  %p1801_p0 = scmp.lt.s32.totalorder %s2141_s27, %s1799_s22 }
  0x75   : > { %p1796_p7 = pnand %p1794_p5, %p1780_p12  ;;  %p1802_p4 = scmp.lt.s32.totalorder %s1800_s25, %s1793_s9 }
  0x77   : > { %p1797_p9 = pneg %p1796_p7  ;;  %p1803_p2 = por %p1802_p4, %p1801_p0 }
  0x79   : > { %p1804_p8 = pnand %p1803_p2, %p1797_p9 }
  0x7b   : > { %1807 = shalt.err (!%p1804_p8)
}
  0x7c   : > { %1599 = dma.hbm_to_vmem [thread:$0]  (!%p2145_p11), %s2139_s18, 64, %s2141_s27, %s334_s23  }
  0x7d   : > { %p2409_p1 = scmp.ne.s32.totalorder %s2403_s21, 0 }
  0x7e   : > { %s2177_s26 = sand.u32 (!%p2409_p1), 1, %s1882_s10   ;;  %p2410_p12 = scmp.ne.s32.totalorder (!%p2409_p1), %s2400_s19, 0 }
  0x7f   : > { %353 = sbr.rel (%p2409_p1) target bundleno = 2757 (0xac5), region = 56  ;;  %s1405_s6 = sshll.u32 (!%p2409_p1), %s2177_s26, 2 }
  0x80   : > { %s356_s30 = scalar_lea.sflag (!%p2409_p1), [#allocation5], %s2177_s26  ;;  %s359_s12 = scalar_lea.vmem (!%p2409_p1), [#allocation4], %s1405_s6 }
  0x86   : > { %1861 = dma.done.wait (%p2410_p12), %s356_s30, 64  }
  0x87   : > { %1863 = vsyncadd (%p2410_p12), %s356_s30, 4294967232  ;;  %p2411_p13 = scmp.ne.s32.totalorder %s2398_s17, 0 }
  0x89   : > { %1865 = dma.done.wait (%p2411_p13), [#allocation8], 512  }
  0x8a   : > { %1867 = vsyncadd (%p2411_p13), [#allocation8], 4294966784 }
  0x8b   : > { %1869 = dma.done.wait (%p2411_p13), [#allocation11], 256  }
  0x8c   : > { %1871 = vsyncadd (%p2411_p13), [#allocation11], 4294967040  ;;  %v1906_v0 = vmov 0.0   ;;  %vm1907_vm0 = vmmov 0   ;;  %v1670_v1 = vld [vmem:[#allocation9] sm:$0xff]   ;;  %v1671_v2 = vld [vmem:[#allocation9 + $0x8] sm:$0xff]  }
  0x8d   : > { %1474 = vmatprep.subr.bf16.mxu0 %v1906_v0  ;;  %1478 = vmatprep.mubr.msk.bf16.mxu0 %vm1907_vm0, %v1906_v0  ;;  %v411_v3 = vld [vmem:[%s359_s12] sm:$0xf]  ;;  %vm435_vm1 = vcmask 261120   ;;  %v1672_v4 = vld [vmem:[#allocation7] sm:$0xff]   ;;  %v1673_v5 = vld [vmem:[#allocation7 + $0x8] sm:$0xff]   ;;  %vm543_vm2 = vcmask 257024  }
  0x8e   : > { %1482 = vmatprep.subr.bf16.mxu1 %v1906_v0  ;;  %1486 = vmatprep.mubr.msk.bf16.mxu1 %vm1907_vm0, %v1906_v0  ;;  %v552_v6 = vld [vmem:[%s359_s12] sm:$0xf]  ;;  %v1674_v7 = vld [vmem:[%s2381_s5] sm:$0xff]   ;;  %v1675_v8 = vld [vmem:[%s2381_s5 + $0x8] sm:$0xff]   ;;  %vm624_vm3 = vcmask 64512   ;;  %s1908_s29 = smov 120  }
  0x8f   : > { %1475 = vmatpush3.bf16.msra.mxu0 %v1670_v1  ;;  %1483 = vmatpush3.bf16.msra.mxu1 %v1674_v7  ;;  %v1410_v9 = vld [vmem:[%s2380_s4] ss:$0 sm:$0xff]  ;;  %s2412_s22 = sld [smem:[#allocation20_spill]]  ;;  %vm686_vm4 = vcmask 1043456   ;;  %s1909_s25 = smov 112  }
  0x90   : > { %1476 = vmatprep.subr.bf16.mxu0 %v1906_v0  ;;  %1484 = vmatprep.subr.bf16.mxu1 %v1906_v0  ;;  %v1418_v16 = vld [vmem:[%s2378_s2] ss:$0 sm:$0xff]  ;;  %v850_v1 = vld [vmem:[#allocation10 + $0x4] sm:$0xf]  ;;  %s1910_s6 = smov 104   ;;  %s2413_s30 = sld [smem:[#allocation18_spill]] }
  0x91   : > { %v731_v7 = vld [vmem:[#allocation10] sm:$0xf]  ;;  %s1409_s12 = sshll.u32 %s2177_s26, 3  ;;  %s2414_s21 = sld [smem:[#allocation21_spill]] }
  0x92   : > { %s405_s27 = scalar_lea.vmem [#allocation12], %s1409_s12  ;;  %s1271_s16 = scalar_lea.sflag [#allocation6], %s2177_s26 }
  0x93   : > { %1477 = vmatpush3.bf16.msra.mxu0 %v1671_v2  ;;  %1485 = vmatpush3.bf16.msra.mxu1 %v1675_v8  ;;  %v855_v2 = vsel %vm686_vm4, %v850_v1, 0  ;;  %s1285_s20 = sshll.u32 %s405_s27, 4  ;;  %s2328_s20 = int_to_ptr.vmem [resolvable:$true] %s1285_s20 }
  0x94   : > { %1490 = vmatprep.subr.bf16.mxu0 %v1906_v0  ;;  %1498 = vmatprep.subr.bf16.mxu1 %v1906_v0 }
  0x95   : > { %v1414_v27 = vld [vmem:[%s2412_s22] ss:$0 sm:$0xff]  ;;  %s1808_s22 = scalar_lea.vmem %s2328_s20, 128 }
  0x96   : > { %1479 = vmatmul.mubr.msk.bf16.vlgmr.msra.gmra.mrb[0].mxu0 %vm435_vm1, %v411_v3  ;;  %1487 = vmatmul.mubr.msk.bf16.vlgmr.msra.gmra.mrb[0].mxu1 %vm435_vm1, %v411_v3  ;;  %s1438_s18 = sshll.u32 %s2413_s30, 7  ;;  %p1809_p11 = scmp.ne.s32.totalorder %s2328_s20, %s1808_s22 }
  0x97   : > { %1491 = vmatpush3.bf16.msra.mxu0 %v1672_v4  ;;  %1494 = vmatprep.mubr.msk.bf16.mxu0 %vm1907_vm0, %v1906_v0 }
  0x98   : > { %1492 = vmatprep.subr.bf16.mxu0 %v1906_v0  ;;  %1500 = vmatprep.mubr.msk.bf16.mxu1 %vm1907_vm0, %v1906_v0  ;;  %p1810_p6 = pnand %p1809_p11, %p2122_p10 }
  0x9a   : > { %p1811_p3 = pneg %p1810_p6 }
  0x9b   : > { %1493 = vmatpush3.bf16.msra.mxu0 %v1673_v5 }
  0x9c   : > { %1504 = vmatprep.subr.bf16.mxu0 %v1906_v0 }
  0x9e   : > { %1495 = vmatmul.mubr.msk.bf16.vlgmr.msra.gmra.mrb[4].mxu0 %vm435_vm1, %v552_v6 }
  0x9f   : > { %1506 = vmatprep.mubr.msk.bf16.mxu0 %vm1907_vm0, %v1906_v0 }
 0x169   : > { %v473_v10 = vpop.f32.mrb[0].mxu0  ;;  %v536_v28 = vpop.f32.mrb[0].mxu1 }
 0x16a   : > { %v474_v11 = vadd.f32 %v1410_v9, %v473_v10  ;;  %v1480_v12 = vpop.f32.mrb[1].mxu0  ;;  %v537_v29 = vadd.f32 %v1414_v27, %v536_v28  ;;  %v1488_v30 = vpop.f32.mrb[1].mxu1  ;;  %v901_v10 = vsel %vm686_vm4, %v731_v7, 0  ;;  %v1213_v7 = vld [vmem:[#allocation10 + $0xc] sm:$0xf] }
 0x16b   : > { %v476_v13 = vpop.f32.mrb[2].mxu0  ;;  %v539_v31 = vpop.f32.mrb[2].mxu1 }
 0x16c   : > { %v542_v14 = vpack.c.bf16 %v474_v11, %v474_v11  ;;  %v1481_v15 = vpop.f32.mrb[3].mxu0  ;;  %v545_v32 = vpack.c.bf16 %v537_v29, %v537_v29  ;;  %v1489_v33 = vpop.f32.mrb[3].mxu1 }
 0x16e   : > { %544 = vst.msk [vmem:[#allocation2] sm:$0xf] %vm543_vm2, %v542_v14  ;;  %546 = vst.msk [vmem:[#allocation3] sm:$0xf] %vm543_vm2, %v545_v32 }
 0x171   : > { %v614_v17 = vpop.f32.mrb[4].mxu0 }
 0x172   : > { %v615_v18 = vadd.f32 %v1418_v16, %v614_v17  ;;  %v1496_v19 = vpop.f32.mrb[5].mxu0 }
 0x173   : > { %v617_v20 = vpop.f32.mrb[6].mxu0 }
 0x174   : > { %v1497_v21 = vpop.f32.mrb[7].mxu0  ;;  %v620_v23 = vmul.f32 0.35355338, %v615_v18 }
 0x175   : > { %v622_v22 = vld [vmem:[#allocation2] sm:$0xf]  ;;  %v623_v34 = vld [vmem:[#allocation3] sm:$0xf] }
 0x176   : > { %v629_v24 = vsel %vm624_vm3, %v622_v22, 0  ;;  %v2228_v25 = vcombine.low %v622_v22, %v622_v22  ;;  %v2233_v26 = vpack.c.bf16 %v620_v23, %v620_v23  ;;  %v688_v35 = vsel %vm686_vm4, %v623_v34, 0 }
 0x177   : > { %1499 = vmatpush3.bf16.xpose.msra.mxu1 %v629_v24  ;;  %1505 = vmatpush3.bf16.msra.mxu0 %v688_v35  ;;  %v2255_v54 = vcombine.low %v623_v34, %v623_v34 }
 0x178   : > { %738 = vrot.lane.b32.xlu0 %v2228_v25, %s1908_s29  ;;  %1510 = vmatprep.subr.bf16.mxu1 %v1906_v0 }
 0x179   : > { %1516 = vmatprep.subr.bf16.mxu0 %v1906_v0 }
 0x17c   : > { %733 = vrot.lane.b32.xlu0 %v2233_v26, %s1908_s29 }
 0x17e   : > { %1501 = vmatmul.mubr.msk.bf16.vlgmr.msra.gmra.mrb[4].mxu1 %vm624_vm3, %v2233_v26 }
 0x17f   : > { %1512 = vmatprep.mubr.msk.bf16.mxu1 %vm1907_vm0, %v1906_v0 }
 0x1ea   : > { %v739_v36 = vpop.permute.xlu0 %738 }
 0x1eb   : > { %v744_v37 = vsel %vm624_vm3, %v739_v36, 0 }
 0x1ec   : > { %1511 = vmatpush3.bf16.xpose.msra.mxu1 %v744_v37 }
 0x1ed   : > { %1522 = vmatprep.subr.bf16.mxu1 %v1906_v0 }
 0x1ee   : > { %v734_v38 = vpop.permute.xlu0 %733 }
 0x1f3   : > { %1513 = vmatmul.mubr.msk.bf16.vlgmr.msra.gmra.mrb[8].mxu1 %vm624_vm3, %v734_v38 }
 0x1f4   : > { %1524 = vmatprep.mubr.msk.bf16.mxu1 %vm1907_vm0, %v1906_v0  ;;  %1523 = vmatpush3.bf16.msra.mxu1 %v855_v2 }
 0x1f5   : > { %1534 = vmatprep.subr.bf16.mxu1 %v1906_v0 }
 0x251   : > { %v665_v39 = vpop.f32.mrb[4].mxu1 }
 0x252   : > { %v1502_v40 = vpop.f32.mrb[5].mxu1  ;;  %v671_v41 = vsel %vm624_vm3, %v665_v39, -inf }
 0x253   : > { %672 = vmax.xlane.f32.xlu1 %v671_v41  ;;  %v668_v42 = vpop.f32.mrb[6].mxu1 }
 0x254   : > { %v1503_v43 = vpop.f32.mrb[7].mxu1 }
 0x2c6   : > { %v780_v44 = vpop.f32.mrb[8].mxu1 }
 0x2c7   : > { %v1514_v45 = vpop.f32.mrb[9].mxu1  ;;  %v786_v46 = vsel %vm624_vm3, %v780_v44, -inf }
 0x2c8   : > { %787 = vmax.xlane.f32.xlu1 %v786_v46  ;;  %v783_v47 = vpop.f32.mrb[10].mxu1 }
 0x2c9   : > { %v1515_v48 = vpop.f32.mrb[11].mxu1 }
 0x2e0   : > { %v673_v49 = vpop.xlane.xlu1 %672 }
 0x2e1   : > { %v674_v50 = vsub.f32 %v665_v39, %v673_v49 }
 0x2e3   : > { %v675_v51 = vmul.f32 1.442695, %v674_v50 }
 0x2e5   : > { %1678 = vpow2.f32 %v675_v51 }
 0x2ef   : > { %v1679_v52 = vpop.eup %1678 }
 0x2f0   : > { %v677_v53 = vsel %vm624_vm3, %v1679_v52, 0.0 }
 0x2f1   : > { %678 = vadd.xlane.f32.xlu0 %v677_v53 }
 0x307   : > { %1005 = vrot.lane.b32.xlu0 %v2255_v54, %s1909_s25 }
 0x355   : > { %v788_v55 = vpop.xlane.xlu1 %787 }
 0x356   : > { %v789_v56 = vsub.f32 %v780_v44, %v788_v55 }
 0x358   : > { %v790_v57 = vmul.f32 1.442695, %v789_v56 }
 0x35a   : > { %1680 = vpow2.f32 %v790_v57 }
 0x364   : > { %v1681_v58 = vpop.eup %1680 }
 0x365   : > { %v792_v59 = vsel %vm624_vm3, %v1681_v58, 0.0 }
 0x366   : > { %793 = vadd.xlane.f32.xlu1 %v792_v59 }
 0x377   : > { %801 = vrot.lane.b32.xlu1 %v2255_v54, %s1908_s29  ;;  %s2415_s29 = sld [smem:[#allocation22_spill]] }
 0x37b   : > { %945 = vrot.lane.b32.xlu1 %v2228_v25, %s1909_s25 }
 0x37d   : > { %s2326_s9 = scalar_lea.hbm %s2415_s29, %s1438_s18 }
 0x37e   : > { %v679_v60 = vpop.xlane.xlu0 %678 }
 0x37f   : > { %1682 = vrcp.f32 %v679_v60  ;;  %943 = vrot.lane.b32.xlu1 %v2233_v26, %s1909_s25  ;;  %s1911_s25 = smov [#allocation12]  }
 0x382   : > { %v1006_v11 = vpop.permute.xlu0 %1005 }
 0x383   : > { %v1011_v16 = vsel %vm686_vm4, %v1006_v11, 0 }
 0x389   : > { %v1683_v61 = vpop.eup %1682 }
 0x38a   : > { %v681_v62 = vmul.f32 %v1683_v61, %v1679_v52 }
 0x38c   : > { %v682_v63 = vpack.c.bf16 %v681_v62, %v681_v62 }
 0x38e   : > { %1507 = vmatmul.mubr.msk.bf16.vlgmr.msra.gmra.mrb[8].mxu0 %vm624_vm3, %v682_v63 }
 0x38f   : > { %1518 = vmatprep.mubr.msk.bf16.mxu0 %vm1907_vm0, %v1906_v0 }
 0x3f3   : > { %v794_v3 = vpop.xlane.xlu1 %793 }
 0x3f4   : > { %1684 = vrcp.f32 %v794_v3 }
 0x3f7   : > { %v802_v4 = vpop.permute.xlu1 %801 }
 0x3f8   : > { %v807_v5 = vsel %vm686_vm4, %v802_v4, 0 }
 0x3f9   : > { %1517 = vmatpush3.bf16.msra.mxu0 %v807_v5 }
 0x3fa   : > { %1528 = vmatprep.subr.bf16.mxu0 %v1906_v0 }
 0x3fb   : > { %v946_v18 = vpop.permute.xlu1 %945 }
 0x3fc   : > { %v951_v23 = vsel %vm624_vm3, %v946_v18, 0 }
 0x3fe   : > { %v1685_v6 = vpop.eup %1684 }
 0x3ff   : > { %v796_v8 = vmul.f32 %v1685_v6, %v1681_v58  ;;  %v944_v27 = vpop.permute.xlu1 %943 }
 0x401   : > { %v797_v9 = vpack.c.bf16 %v796_v8, %v796_v8 }
 0x403   : > { %1519 = vmatmul.mubr.msk.bf16.vlgmr.msra.gmra.mrb[12].mxu0 %vm624_vm3, %v797_v9 }
 0x404   : > { %1529 = vmatpush3.bf16.msra.mxu0 %v901_v10  ;;  %1530 = vmatprep.mubr.msk.bf16.mxu0 %vm1907_vm0, %v1906_v0 }
 0x405   : > { %1540 = vmatprep.subr.bf16.mxu0 %v1906_v0 }
 0x461   : > { %v724_v12 = vpop.f32.mrb[8].mxu0 }
 0x462   : > { %v730_v13 = vpack.c.bf16 %v724_v12, %v724_v12  ;;  %v1508_v14 = vpop.f32.mrb[9].mxu0 }
 0x463   : > { %v727_v15 = vpop.f32.mrb[10].mxu0 }
 0x464   : > { %v1509_v17 = vpop.f32.mrb[11].mxu0  ;;  %1531 = vmatmul.mubr.msk.bf16.vlgmr.msra.gmra.mrb[16].mxu0 %vm624_vm3, %v730_v13 }
 0x465   : > { %1541 = vmatpush3.bf16.msra.mxu0 %v1011_v16  ;;  %1542 = vmatprep.mubr.msk.bf16.mxu0 %vm1907_vm0, %v1906_v0 }
 0x466   : > { %1552 = vmatprep.subr.bf16.mxu0 %v1906_v0 }
 0x4d6   : > { %v843_v19 = vpop.f32.mrb[12].mxu0 }
 0x4d7   : > { %v849_v20 = vpack.c.bf16 %v843_v19, %v843_v19  ;;  %v1520_v21 = vpop.f32.mrb[13].mxu0 }
 0x4d8   : > { %v846_v22 = vpop.f32.mrb[14].mxu0 }
 0x4d9   : > { %v1521_v24 = vpop.f32.mrb[15].mxu0  ;;  %1525 = vmatmul.mubr.msk.bf16.vlgmr.msra.gmra.mrb[12].mxu1 %vm624_vm3, %v849_v20 }
 0x4da   : > { %1535 = vmatpush3.bf16.xpose.msra.mxu1 %v951_v23  ;;  %1536 = vmatprep.mubr.msk.bf16.mxu1 %vm1907_vm0, %v1906_v0  ;;  %v1436_v24 = vld [vmem:[%s2414_s21] ss:$0 sm:$0xff] }
 0x4db   : > { %1546 = vmatprep.subr.bf16.mxu1 %v1906_v0 }
 0x4e1   : > { %1537 = vmatmul.mubr.msk.bf16.vlgmr.msra.gmra.mrb[16].mxu1 %vm624_vm3, %v944_v27 }
 0x4e2   : > { %1548 = vmatprep.mubr.msk.bf16.mxu1 %vm1907_vm0, %v1906_v0 }
 0x537   : > { %v937_v28 = vpop.f32.mrb[16].mxu0 }
 0x538   : > { %v1532_v29 = vpop.f32.mrb[17].mxu0 }
 0x539   : > { %v940_v30 = vpop.f32.mrb[18].mxu0 }
 0x53a   : > { %v1533_v31 = vpop.f32.mrb[19].mxu0 }
 0x5ac   : > { %v891_v32 = vpop.f32.mrb[12].mxu1 }
 0x5ad   : > { %v2288_v33 = vadd.f32 %v937_v28, %v891_v32  ;;  %v1526_v34 = vpop.f32.mrb[13].mxu1 }
 0x5ae   : > { %v894_v35 = vpop.f32.mrb[14].mxu1 }
 0x5af   : > { %v1527_v36 = vpop.f32.mrb[15].mxu1 }
 0x5b4   : > { %v987_v37 = vpop.f32.mrb[16].mxu1 }
 0x5b5   : > { %v1538_v38 = vpop.f32.mrb[17].mxu1  ;;  %v993_v39 = vsel %vm624_vm3, %v987_v37, -inf }
 0x5b6   : > { %994 = vmax.xlane.f32.xlu1 %v993_v39  ;;  %v990_v40 = vpop.f32.mrb[18].mxu1 }
 0x5b7   : > { %v1539_v41 = vpop.f32.mrb[19].mxu1 }
 0x643   : > { %v995_v42 = vpop.xlane.xlu1 %994 }
 0x644   : > { %v996_v43 = vsub.f32 %v987_v37, %v995_v42 }
 0x646   : > { %v997_v44 = vmul.f32 1.442695, %v996_v43 }
 0x648   : > { %1686 = vpow2.f32 %v997_v44 }
 0x652   : > { %v1687_v45 = vpop.eup %1686 }
 0x653   : > { %v999_v46 = vsel %vm624_vm3, %v1687_v45, 0.0 }
 0x654   : > { %1000 = vadd.xlane.f32.xlu0 %v999_v46 }
 0x66a   : > { %1104 = vrot.lane.b32.xlu0 %v2228_v25, %s1910_s6 }
 0x66e   : > { %1102 = vrot.lane.b32.xlu0 %v2233_v26, %s1910_s6  ;;  %v1054_v26 = vld [vmem:[#allocation10 + $0x8] sm:$0xf] }
 0x66f   : > { %v1059_v53 = vsel %vm686_vm4, %v1054_v26, 0 }
 0x670   : > { %1547 = vmatpush3.bf16.msra.mxu1 %v1059_v53 }
 0x671   : > { %1558 = vmatprep.subr.bf16.mxu1 %v1906_v0 }
 0x6e1   : > { %v1001_v47 = vpop.xlane.xlu0 %1000 }
 0x6e2   : > { %1688 = vrcp.f32 %v1001_v47 }
 0x6e5   : > { %v1105_v50 = vpop.permute.xlu0 %1104 }
 0x6e6   : > { %v1110_v52 = vsel %vm624_vm3, %v1105_v50, 0 }
 0x6e9   : > { %v1103_v25 = vpop.permute.xlu0 %1102 }
 0x6ec   : > { %v1689_v48 = vpop.eup %1688 }
 0x6ed   : > { %v1003_v49 = vmul.f32 %v1689_v48, %v1687_v45 }
 0x6ef   : > { %v1004_v51 = vpack.c.bf16 %v1003_v49, %v1003_v49 }
 0x6f1   : > { %1543 = vmatmul.mubr.msk.bf16.vlgmr.msra.gmra.mrb[20].mxu0 %vm624_vm3, %v1004_v51 }
 0x6f2   : > { %1553 = vmatpush3.bf16.xpose.msra.mxu0 %v1110_v52  ;;  %1554 = vmatprep.mubr.msk.bf16.mxu0 %vm1907_vm0, %v1906_v0 }
 0x6f3   : > { %1564 = vmatprep.subr.bf16.mxu0 %v1906_v0 }
 0x6f9   : > { %1555 = vmatmul.mubr.msk.bf16.vlgmr.msra.gmra.mrb[24].mxu0 %vm624_vm3, %v1103_v25 }
 0x6fa   : > { %1566 = vmatprep.mubr.msk.bf16.mxu0 %vm1907_vm0, %v1906_v0 }
 0x7c4   : > { %v1047_v55 = vpop.f32.mrb[20].mxu0 }
 0x7c5   : > { %v1053_v56 = vpack.c.bf16 %v1047_v55, %v1047_v55  ;;  %v1544_v57 = vpop.f32.mrb[21].mxu0 }
 0x7c6   : > { %v1050_v58 = vpop.f32.mrb[22].mxu0 }
 0x7c7   : > { %v1545_v59 = vpop.f32.mrb[23].mxu0  ;;  %1549 = vmatmul.mubr.msk.bf16.vlgmr.msra.gmra.mrb[20].mxu1 %vm624_vm3, %v1053_v56 }
 0x7c8   : > { %1560 = vmatprep.mubr.msk.bf16.mxu1 %vm1907_vm0, %v1906_v0  ;;  %v1218_v0 = vsel %vm686_vm4, %v1213_v7, 0 }
 0x7c9   : > { %1565 = vmatpush3.bf16.msra.mxu0 %v1218_v0 }
 0x7cc   : > { %v1146_v60 = vpop.f32.mrb[24].mxu0 }
 0x7cd   : > { %v1556_v61 = vpop.f32.mrb[25].mxu0  ;;  %v1152_v62 = vsel %vm624_vm3, %v1146_v60, -inf }
 0x7ce   : > { %1153 = vmax.xlane.f32.xlu0 %v1152_v62  ;;  %v1149_v63 = vpop.f32.mrb[26].mxu0 }
 0x7cf   : > { %v1557_v1 = vpop.f32.mrb[27].mxu0 }
 0x85b   : > { %v1154_v2 = vpop.xlane.xlu0 %1153 }
 0x85c   : > { %v1155_v3 = vsub.f32 %v1146_v60, %v1154_v2 }
 0x85e   : > { %v1156_v4 = vmul.f32 1.442695, %v1155_v3 }
 0x860   : > { %1690 = vpow2.f32 %v1156_v4 }
 0x86a   : > { %v1691_v5 = vpop.eup %1690 }
 0x86b   : > { %v1158_v6 = vsel %vm624_vm3, %v1691_v5, 0.0 }
 0x86c   : > { %1159 = vadd.xlane.f32.xlu1 %v1158_v6 }
 0x87d   : > { %1164 = vrot.lane.b32.xlu1 %v2255_v54, %s1910_s6  ;;  %s1812_s6 = sshll.u32 %s1911_s25, 4  ;;  %s1813_s6 = int_to_ptr.vmem [resolvable:$false] %s1812_s6 }
 0x87e   : > { %s1814_s30 = scalar_lea.vmem %s1813_s6, 256  ;;  %p1815_p5 = scmp.lt.s32.totalorder %s2328_s20, %s1813_s6 }
 0x87f   : > { %p1816_p7 = scmp.lt.s32.totalorder %s1814_s30, %s1808_s22 }
 0x881   : > { %p1817_p9 = por %p1816_p7, %p1815_p5 }
 0x883   : > { %p1818_p0 = pnand %p1817_p9, %p1811_p3 }
 0x89a   : > { %v1095_v8 = vpop.f32.mrb[20].mxu1 }
 0x89b   : > { %v1101_v9 = vadd.f32 %v1095_v8, %v2288_v33  ;;  %v1550_v10 = vpop.f32.mrb[21].mxu1 }
 0x89c   : > { %v1098_v11 = vpop.f32.mrb[22].mxu1 }
 0x89d   : > { %v1551_v12 = vpop.f32.mrb[23].mxu1 }
 0x8f9   : > { %v1160_v13 = vpop.xlane.xlu1 %1159 }
 0x8fa   : > { %1692 = vrcp.f32 %v1160_v13 }
 0x8fd   : > { %v1165_v14 = vpop.permute.xlu1 %1164 }
 0x8fe   : > { %v1170_v15 = vsel %vm686_vm4, %v1165_v14, 0 }
 0x8ff   : > { %1559 = vmatpush3.bf16.msra.mxu1 %v1170_v15 }
 0x904   : > { %v1693_v16 = vpop.eup %1692 }
 0x905   : > { %v1162_v54 = vmul.f32 %v1693_v16, %v1691_v5 }
 0x907   : > { %v1163_v17 = vpack.c.bf16 %v1162_v54, %v1162_v54 }
 0x909   : > { %1561 = vmatmul.mubr.msk.bf16.vlgmr.msra.gmra.mrb[24].mxu1 %vm624_vm3, %v1163_v17 }
 0x9dc   : > { %v1206_v18 = vpop.f32.mrb[24].mxu1 }
 0x9dd   : > { %v1212_v19 = vpack.c.bf16 %v1206_v18, %v1206_v18  ;;  %v1562_v20 = vpop.f32.mrb[25].mxu1 }
 0x9de   : > { %v1209_v21 = vpop.f32.mrb[26].mxu1 }
 0x9df   : > { %v1563_v22 = vpop.f32.mrb[27].mxu1  ;;  %1567 = vmatmul.mubr.msk.bf16.vlgmr.msra.gmra.mrb[28].mxu0 %vm624_vm3, %v1212_v19 }
 0xab2   : > { %v1254_v23 = vpop.f32.mrb[28].mxu0 }
 0xab3   : > { %v1260_v27 = vadd.f32 %v1254_v23, %v1101_v9  ;;  %v1568_v28 = vpop.f32.mrb[29].mxu0 }
 0xab4   : > { %v1257_v29 = vpop.f32.mrb[30].mxu0 }
 0xab5   : > { %v1268_v30 = vadd.f32 %v1436_v24, %v1260_v27  ;;  %v1569_v31 = vpop.f32.mrb[31].mxu0 }
 0xab7   : > { %1269 = vst.msk [vmem:[%s405_s27] sm:$0xff] %vm435_vm1, %v1268_v30 }
 0xab8   : > { %1821 = shalt.err (!%p1818_p0)
}
 0xab9   : > { %s1822_s26 = scalar_lea.hbm %s2326_s9, 128  ;;  %s1826_s19 = scalar_lea.hbm %s2415_s29, 256 }
 0xaba   : > { %p1823_p4 = scmp.ne.s32.totalorder %s2326_s9, %s1822_s26  ;;  %p1827_p1 = scmp.lt.u32.totalorder %s2326_s9, %s2415_s29 }
 0xabb   : > { %p1828_p12 = scmp.lt.u32.totalorder %s1826_s19, %s1822_s26  ;;  %p1830_p11 = scmp.lt.u32.totalorder %s1822_s26, %s2326_s9 }
 0xabc   : > { %p1824_p2 = pnand %p1823_p4, %p2122_p10 }
 0xabd   : > { %p1829_p13 = por %p1828_p12, %p1827_p1 }
 0xabe   : > { %p1825_p8 = pneg %p1824_p2 }
 0xabf   : > { %p1831_p6 = por %p1830_p11, %p1829_p13 }
 0xac1   : > { %p1832_p3 = pnand %p1831_p6, %p1825_p8 }
 0xac3   : > { %1835 = shalt.err (!%p1832_p3)
}
 0xac4   : > { %1584 = dma.vmem_to_hbm [thread:$0]  (%p2122_p10), %s2328_s20, 128, %s2326_s9, %s1271_s16  }
 0xac5 PF: > { %s2416_s27 = sld [smem:[#allocation17_spill]]  ;;  %s2417_s23 = sld [smem:[#allocation19_spill]] }
 0xac6   : > { %p2419_p7 = scmp.ge.s32.totalorder %s1898_s14, 2 }
 0xacb   : > { %s1297_s28 = sand.u32 1, %s2416_s27   ;;  %p2418_p5 = scmp.ne.s32.totalorder %s2417_s23, 0 }
 0xacc   : > { %s1298_s22 = scalar_lea.sflag [#allocation6], %s1297_s28 }
 0xacd   : > { %p1601_p9 = pnand %p2419_p7, %p2418_p5 }
 0xacf   : > { %1873 = dma.done.wait (!%p1601_p9), %s1298_s22, 128  }
 0xad0   : > { %1875 = vsyncadd (!%p1601_p9), %s1298_s22, 4294967168  ;;  %s27_s14 = sadd.s32 1, %s1898_s14   ;;  %s2420_s30 = smov %s1882_s10 }
 0xad1   : > { %p24_p0 = scmp.ge.s32.totalorder %s27_s14, 4   ;;  %s2421_s10 = smov %s1886_s11 }
 0xad2   : > { %s2422_s11 = smov %s2134_s15  ;;  %s2423_s12 = smov %s1894_s13 }
 0xad3   : > { %s2424_s13 = smov %s2426_s24  ;;  %26 = sbr.rel (!%p24_p0) target bundleno = 12 (0xc), region = 118 }
 0xada   :  { %1303 = vsyncpa [#allocation5], 1 }
 0xadb   :  { %1305 = vsyncpa [#allocation5 + $0x1], 1 }
 0xadc   :  { %1306 = vsyncpa [#allocation8], 1 }
 0xadd   :  { %1307 = vsyncpa [#allocation11], 1 }
 0xade   :  { %1308 = vsyncpa [#allocation6], 1 }
 0xadf   :  { %1310 = vsyncpa [#allocation6 + $0x1], 1 }

</bundles_post_ra>
